<compile_context>
chip_gen: v7x
topology: tpu7x:2x2x1
jax: 0.10.0
libtpu: 0.0.40
codegen_flags: <defaults>
</compile_context>

<pallas_src>
import jax
import jax.numpy as jnp
from jax.experimental import pallas as pl
from jax.experimental.pallas import tpu as pltpu


def _round_up(a, b):
    return ((a + b - 1) // b) * b


def _cdiv(a, b):
    return (a + b - 1) // b


def _vmem_capacity_bytes():
    """Physical VMEM per TensorCore; conservative 64 MiB fallback."""
    try:
        cap = int(pltpu.get_tpu_info().vmem_capacity_bytes)
        if cap > 0:
            return cap
    except Exception:
        pass
    return 64 * 1024 * 1024


def _vmem_need_bytes(tm, tf, d_model, x_isz, w_isz):
    """Double-buffered tiles + scratch for one grid step."""
    return (2 * tm * d_model * x_isz          # x tiles
            + 2 * d_model * tf * w_isz        # W1^T chunk
            + 2 * tf * w_isz                  # b1 chunk
            + 2 * tf * d_model * w_isz        # W2^T chunk
            + 2 * d_model * w_isz             # b2
            + 2 * tm * d_model * x_isz        # out tiles
            + tm * d_model * 4                # f32 accumulator scratch
            + tm * tf * 4)                    # h intermediate (f32)


def _ffn_kernel(x_ref, w1_ref, b1_ref, w2_ref, b2_ref, o_ref, acc_ref):
    # x_ref  : (tm, d_model)   current row tile
    # w1_ref : (d_model, tf)   contiguous chunk of W1^T (leading block dim squeezed)
    # b1_ref : (1, tf)         chunk of b1
    # w2_ref : (tf, d_model)   chunk of W2^T
    # b2_ref : (1, d_model)
    # o_ref  : (tm, d_model)   output tile (resident across the f axis)
    # acc_ref: (tm, d_model)   f32 VMEM accumulator
    f = pl.program_id(1)

    h = jnp.dot(x_ref[...], w1_ref[...], preferred_element_type=jnp.float32)
    h = jnp.maximum(h + b1_ref[...].astype(jnp.float32), 0.0)
    prod = jnp.dot(h.astype(w2_ref.dtype), w2_ref[...],
                   preferred_element_type=jnp.float32)

    # Initialize with the first chunk's product instead of zero-fill + add:
    # saves a full (tm, d_model) f32 store/read pass per row tile.
    @pl.when(f == 0)
    def _():
        acc_ref[...] = prod

    @pl.when(f > 0)
    def _():
        acc_ref[...] += prod

    @pl.when(f == pl.num_programs(1) - 1)
    def _():
        o_ref[...] = (acc_ref[...] + b2_ref[...].astype(jnp.float32)
                      ).astype(o_ref.dtype)


def prepare_ffn_params(w1, b1, w2, b2, *, tf=None, compute_dtype=None):
    """One-time parameter preprocessing (do NOT call per forward pass).

    Takes PyTorch nn.Linear layouts  w1: (d_ff, d_model), b1: (d_ff,),
    w2: (d_model, d_ff), b2: (d_model,).  Returns:
      w1_blk: (nf, d_model, tf)  W1^T pre-blocked along d_ff (contiguous chunks)
      b1_2  : (1, f_pad)
      w2_t  : (f_pad, d_model)   W2^T
      b2_2  : (1, d_model)
      tf_eff: chosen d_ff chunk size
    Zero-padding d_ff is exact: padded hidden units give relu(0 + 0) = 0 and the
    corresponding padded W2 rows are zero.  Pass compute_dtype=jnp.bfloat16 to
    cast weights once for the MXU bf16 fast path (cast x to match)."""
    d_ff, d_model = w1.shape

    cap = _vmem_capacity_bytes()
    if tf is None:
        # Smaller d_ff chunk on 64-MiB-VMEM chips (v7x) for very wide models.
        tf = 256 if (cap < 100 * 1024 * 1024 and d_model >= 8192) else 512
    if d_ff <= tf:
        tf_eff = d_ff                         # single chunk, full d_ff
    else:
        tf_eff = max(128, (tf // 128) * 128)  # lane-aligned chunk size
    f_pad = _round_up(d_ff, tf_eff)
    nf = f_pad // tf_eff

    w1p = w1
    b1p = b1
    w2p = w2
    if f_pad != d_ff:
        w1p = jnp.pad(w1p, ((0, f_pad - d_ff), (0, 0)))
        b1p = jnp.pad(b1p, ((0, f_pad - d_ff),))
        w2p = jnp.pad(w2p, ((0, 0), (0, f_pad - d_ff)))

    # Pre-block W1^T: (f_pad, d_model) -> (nf, tf, d_model) -> (nf, d_model, tf)
    # so each d_ff chunk of W1^T is one contiguous HBM slab.
    w1_blk = w1p.reshape(nf, tf_eff, d_model).transpose(0, 2, 1)
    b1_2 = b1p.reshape(1, f_pad)
    w2_t = w2p.T                              # (f_pad, d_model), chunks contiguous
    b2_2 = b2.reshape(1, d_model)

    if compute_dtype is not None:
        w1_blk = w1_blk.astype(compute_dtype)
        b1_2 = b1_2.astype(compute_dtype)
        w2_t = w2_t.astype(compute_dtype)
        b2_2 = b2_2.astype(compute_dtype)

    return w1_blk, b1_2, w2_t, b2_2, tf_eff


def feed_forward(x, w1_blk, b1_2, w2_t, b2_2, tf_eff, *, tm=None):
    """x: (B, S, d_model); remaining args come from prepare_ffn_params()."""
    B, S, d_model = x.shape
    nf, _, _ = w1_blk.shape
    f_pad = nf * tf_eff
    assert w2_t.shape == (f_pad, d_model)

    x_isz = jnp.dtype(x.dtype).itemsize
    w_isz = jnp.dtype(w1_blk.dtype).itemsize
    sub = max(8, 32 // x_isz)                 # sublane multiple: 8 f32, 16 bf16

    cap = _vmem_capacity_bytes()
    budget = int(cap * 0.8)                   # leave headroom for compiler scratch

    M = B * S
    if tm is None:
        # 128-MiB-VMEM chips (v5e/v6e): big row tiles for arithmetic intensity;
        # 64-MiB chips (v7x): 512 is already past the ~310 FLOP/byte ridge.
        tm = 1024 if cap >= 100 * 1024 * 1024 else 512
    tm_eff = _round_up(min(tm, _round_up(M, sub)), sub)

    # Shrink the row tile (never silently clamp the VMEM limit) until we fit.
    while (_vmem_need_bytes(tm_eff, tf_eff, d_model, x_isz, w_isz) > budget
           and tm_eff > sub):
        tm_eff = max(sub, _round_up(tm_eff // 2, sub))

    # Guarantee >= 2 row tiles when possible so both v7x TensorCores get work.
    if _cdiv(M, tm_eff) < 2:
        half = _round_up(_cdiv(M, 2), sub)
        if half < tm_eff:
            tm_eff = half

    m_pad = _round_up(M, tm_eff)
    x2 = x.reshape(M, d_model)
    if m_pad != M:
        x2 = jnp.pad(x2, ((0, m_pad - M), (0, 0)))   # padded rows sliced off below

    grid = (m_pad // tm_eff, nf)

    need = _vmem_need_bytes(tm_eff, tf_eff, d_model, x_isz, w_isz)
    vmem_limit = int(min(max(need * 3 // 2, 32 * 1024 * 1024), cap))

    out = pl.pallas_call(
        _ffn_kernel,
        out_shape=jax.ShapeDtypeStruct((m_pad, d_model), x.dtype),
        grid_spec=pltpu.PrefetchScalarGridSpec(
            num_scalar_prefetch=0,
            grid=grid,
            in_specs=[
                pl.BlockSpec((tm_eff, d_model), lambda i, f: (i, 0)),      # x rows
                pl.BlockSpec((pl.Squeezed(), d_model, tf_eff),
                             lambda i, f: (f, 0, 0)),                      # W1^T chunk
                pl.BlockSpec((1, tf_eff), lambda i, f: (0, f)),            # b1 chunk
                pl.BlockSpec((tf_eff, d_model), lambda i, f: (f, 0)),      # W2^T chunk
                pl.BlockSpec((1, d_model), lambda i, f: (0, 0)),           # b2
            ],
            out_specs=pl.BlockSpec((tm_eff, d_model), lambda i, f: (i, 0)),
            scratch_shapes=[pltpu.VMEM((tm_eff, d_model), jnp.float32)],
        ),
        compiler_params=pltpu.CompilerParams(
            dimension_semantics=("parallel", "arbitrary"),
            vmem_limit_bytes=vmem_limit,
        ),
    )(x2, w1_blk, b1_2, w2_t, b2_2)

    return out[:M].reshape(B, S, d_model)


def _init_params(key, d_model, d_ff, dtype=jnp.float32):
    # Deterministic init mimicking nn.Linear's uniform(-1/sqrt(fan_in), 1/sqrt(fan_in)).
    k1, k2, k3, k4 = jax.random.split(key, 4)
    bound1 = 1.0 / (d_model ** 0.5)
    bound2 = 1.0 / (d_ff ** 0.5)
    w1 = jax.random.uniform(k1, (d_ff, d_model), dtype, -bound1, bound1)
    b1 = jax.random.uniform(k2, (d_ff,), dtype, -bound1, bound1)
    w2 = jax.random.uniform(k3, (d_model, d_ff), dtype, -bound2, bound2)
    b2 = jax.random.uniform(k4, (d_model,), dtype, -bound2, bound2)
    return w1, b1, w2, b2


def _reference(x, w1, b1, w2, b2):
    return jnp.maximum(x @ w1.T + b1, 0.0) @ w2.T + b2


if __name__ == "__main__":
    key = jax.random.PRNGKey(0)

    # Case 1: small FFN, single hidden-dim chunk (tf_eff == d_ff).
    kx, kp, key = jax.random.split(key, 3)
    B, S, d_model, d_ff = 2, 8, 32, 64
    x = jax.random.normal(kx, (B, S, d_model), jnp.float32)
    w1, b1, w2, b2 = _init_params(kp, d_model, d_ff)
    params = prepare_ffn_params(w1, b1, w2, b2)
    y = jax.block_until_ready(feed_forward(x, *params))
    assert y.shape == (B, S, d_model)
    assert jnp.allclose(y, _reference(x, w1, b1, w2, b2), atol=1e-5, rtol=1e-5)

    # Case 2: exercises the d_ff reduction axis (2 chunks via tf=128), row
    # padding (M = 21 tokens), and the >=2-row-tile megacore split.
    kx, kp, key = jax.random.split(key, 3)
    B, S, d_model, d_ff = 3, 7, 32, 256
    x = jax.random.normal(kx, (B, S, d_model), jnp.float32)
    w1, b1, w2, b2 = _init_params(kp, d_model, d_ff)
    params = prepare_ffn_params(w1, b1, w2, b2, tf=128)
    y = jax.block_until_ready(feed_forward(x, *params))
    assert y.shape == (B, S, d_model)
    assert jnp.allclose(y, _reference(x, w1, b1, w2, b2), atol=1e-5, rtol=1e-5)

    # Case 3: bf16 fast path (weights cast once at prepare time, x cast by the
    # caller, f32 accumulation in-kernel).  Exercises 16-row sublane rounding.
    kx, kp = jax.random.split(key)
    B, S, d_model, d_ff = 2, 10, 64, 128
    x = jax.random.normal(kx, (B, S, d_model), jnp.float32)
    w1, b1, w2, b2 = _init_params(kp, d_model, d_ff)
    params = prepare_ffn_params(w1, b1, w2, b2, compute_dtype=jnp.bfloat16)
    x_bf = x.astype(jnp.bfloat16)
    y = jax.block_until_ready(feed_forward(x_bf, *params))
    assert y.shape == (B, S, d_model)
    ref = _reference(x_bf.astype(jnp.float32),
                     w1.astype(jnp.bfloat16).astype(jnp.float32),
                     b1.astype(jnp.bfloat16).astype(jnp.float32),
                     w2.astype(jnp.bfloat16).astype(jnp.float32),
                     b2.astype(jnp.bfloat16).astype(jnp.float32))
    assert jnp.allclose(y.astype(jnp.float32), ref, atol=5e-2, rtol=5e-2)

    print("KERNEL_OK")
</pallas_src>

<mosaic_0001>
module attributes {stable_mosaic.version = 11 : i64} {
  func.func @_ffn_kernel(%arg0: i32, %arg1: i32, %arg2: memref<8x32xf32, #tpu.memory_space<vmem>>, %arg3: memref<1x32x64xf32, #tpu.memory_space<vmem>>, %arg4: memref<1x64xf32, #tpu.memory_space<vmem>>, %arg5: memref<64x32xf32, #tpu.memory_space<vmem>>, %arg6: memref<1x32xf32, #tpu.memory_space<vmem>>, %arg7: memref<8x32xf32, #tpu.memory_space<vmem>>, %arg8: memref<8x32xf32, #tpu.memory_space<vmem>>) attributes {dimension_semantics = [#tpu.dimension_semantics<parallel>, #tpu.dimension_semantics<arbitrary>], iteration_bounds = array<i64: 2, 1>, scalar_prefetch = 0 : i64, scratch_operands = 1 : i64, tpu.core_type = #tpu.core_type<tc>, window_params = [{transform_indices = @transform_0, window_bounds = array<i64: 8, 32>}, {transform_indices = @transform_1, window_bounds = array<i64: 1, 32, 64>}, {transform_indices = @transform_2, window_bounds = array<i64: 1, 64>}, {transform_indices = @transform_3, window_bounds = array<i64: 64, 32>}, {pipeline_mode = #tpu.pipeline_mode<synchronous>, transform_indices = @transform_4, window_bounds = array<i64: 1, 32>}, {transform_indices = @transform_5, window_bounds = array<i64: 8, 32>}]} {
    %c0 = arith.constant 0 : index
    %c0_0 = arith.constant 0 : index
    %0 = vector.load %arg2[%c0, %c0_0] : memref<8x32xf32, #tpu.memory_space<vmem>>, vector<8x32xf32>
    %c0_1 = arith.constant 0 : index
    %c0_2 = arith.constant 0 : index
    %c0_3 = arith.constant 0 : index
    %1 = vector.load %arg3[%c0_1, %c0_2, %c0_3] : memref<1x32x64xf32, #tpu.memory_space<vmem>>, vector<1x32x64xf32>
    %2 = vector.shape_cast %1 : vector<1x32x64xf32> to vector<32x64xf32>
    %cst = arith.constant dense<0.000000e+00> : vector<8x64xf32>
    %3 = tpu.matmul %0, %2, %cst {dimension_numbers = #tpu.dot_dimension_numbers<[1], [0], [0], [1], [0, 0, 1, 1], [], []>} : vector<8x32xf32>, vector<32x64xf32>, vector<8x64xf32> -> vector<8x64xf32>
    %c0_4 = arith.constant 0 : index
    %c0_5 = arith.constant 0 : index
    %4 = vector.load %arg4[%c0_4, %c0_5] : memref<1x64xf32, #tpu.memory_space<vmem>>, vector<1x64xf32>
    %5 = vector.broadcast %4 : vector<1x64xf32> to vector<8x64xf32>
    %6 = arith.addf %3, %5 : vector<8x64xf32>
    %cst_6 = arith.constant 0.000000e+00 : f32
    %7 = vector.broadcast %cst_6 : f32 to vector<8x64xf32>
    %8 = arith.maximumf %6, %7 : vector<8x64xf32>
    %c0_7 = arith.constant 0 : index
    %c0_8 = arith.constant 0 : index
    %9 = vector.load %arg5[%c0_7, %c0_8] : memref<64x32xf32, #tpu.memory_space<vmem>>, vector<64x32xf32>
    %cst_9 = arith.constant dense<0.000000e+00> : vector<8x32xf32>
    %10 = tpu.matmul %8, %9, %cst_9 {dimension_numbers = #tpu.dot_dimension_numbers<[1], [0], [0], [1], [0, 0, 1, 1], [], []>} : vector<8x64xf32>, vector<64x32xf32>, vector<8x32xf32> -> vector<8x32xf32>
    %c0_i32 = arith.constant 0 : i32
    %11 = arith.cmpi eq, %arg1, %c0_i32 : i32
    %12 = arith.extui %11 : i1 to i32
    %c0_i32_10 = arith.constant 0 : i32
    %13 = arith.cmpi ne, %12, %c0_i32_10 : i32
    scf.if %13 {
      %c0_15 = arith.constant 0 : index
      %c0_16 = arith.constant 0 : index
      %20 = vector.load %arg8[%c0_15, %c0_16] : memref<8x32xf32, #tpu.memory_space<vmem>>, vector<8x32xf32>
      tpu.vector_store %arg8[%c0_15, %c0_16], %10 {strides = array<i32>} : memref<8x32xf32, #tpu.memory_space<vmem>>, vector<8x32xf32>,
    } else {
    }
    %c0_i32_11 = arith.constant 0 : i32
    %14 = arith.cmpi sgt, %arg1, %c0_i32_11 : i32
    %15 = arith.extui %14 : i1 to i32
    %c0_i32_12 = arith.constant 0 : i32
    %16 = arith.cmpi ne, %15, %c0_i32_12 : i32
    scf.if %16 {
      %c0_15 = arith.constant 0 : index
      %c0_16 = arith.constant 0 : index
      %20 = vector.load %arg8[%c0_15, %c0_16] : memref<8x32xf32, #tpu.memory_space<vmem>>, vector<8x32xf32>
      %21 = arith.addf %20, %10 : vector<8x32xf32>
      %c0_17 = arith.constant 0 : index
      %c0_18 = arith.constant 0 : index
      %22 = vector.load %arg8[%c0_17, %c0_18] : memref<8x32xf32, #tpu.memory_space<vmem>>, vector<8x32xf32>
      tpu.vector_store %arg8[%c0_17, %c0_18], %21 {strides = array<i32>} : memref<8x32xf32, #tpu.memory_space<vmem>>, vector<8x32xf32>,
    } else {
    }
    %c0_i32_13 = arith.constant 0 : i32
    %17 = arith.cmpi eq, %arg1, %c0_i32_13 : i32
    %18 = arith.extui %17 : i1 to i32
    %c0_i32_14 = arith.constant 0 : i32
    %19 = arith.cmpi ne, %18, %c0_i32_14 : i32
    scf.if %19 {
      %c0_15 = arith.constant 0 : index
      %c0_16 = arith.constant 0 : index
      %20 = vector.load %arg8[%c0_15, %c0_16] : memref<8x32xf32, #tpu.memory_space<vmem>>, vector<8x32xf32>
      %c0_17 = arith.constant 0 : index
      %c0_18 = arith.constant 0 : index
      %21 = vector.load %arg6[%c0_17, %c0_18] : memref<1x32xf32, #tpu.memory_space<vmem>>, vector<1x32xf32>
      %22 = vector.broadcast %21 : vector<1x32xf32> to vector<8x32xf32>
      %23 = arith.addf %20, %22 : vector<8x32xf32>
      %c0_19 = arith.constant 0 : index
      %c0_20 = arith.constant 0 : index
      %24 = vector.load %arg7[%c0_19, %c0_20] : memref<8x32xf32, #tpu.memory_space<vmem>>, vector<8x32xf32>
      tpu.vector_store %arg7[%c0_19, %c0_20], %23 {strides = array<i32>} : memref<8x32xf32, #tpu.memory_space<vmem>>, vector<8x32xf32>,
    } else {
    }
    return
  }
  func.func @transform_0(%arg0: i32, %arg1: i32) -> (i32, i32) {
    %c0_i32 = arith.constant 0 : i32
    %c0_i32_0 = arith.constant 0 : i32
    return %arg0, %c0_i32 : i32, i32
  }
  func.func @transform_1(%arg0: i32, %arg1: i32) -> (i32, i32, i32) {
    %c0_i32 = arith.constant 0 : i32
    %c0_i32_0 = arith.constant 0 : i32
    %c0_i32_1 = arith.constant 0 : i32
    return %arg1, %c0_i32, %c0_i32_0 : i32, i32, i32
  }
  func.func @transform_2(%arg0: i32, %arg1: i32) -> (i32, i32) {
    %c0_i32 = arith.constant 0 : i32
    %c0_i32_0 = arith.constant 0 : i32
    return %c0_i32, %arg1 : i32, i32
  }
  func.func @transform_3(%arg0: i32, %arg1: i32) -> (i32, i32) {
    %c0_i32 = arith.constant 0 : i32
    %c0_i32_0 = arith.constant 0 : i32
    return %arg1, %c0_i32 : i32, i32
  }
  func.func @transform_4(%arg0: i32, %arg1: i32) -> (i32, i32) {
    %c0_i32 = arith.constant 0 : i32
    %c0_i32_0 = arith.constant 0 : i32
    %c0_i32_1 = arith.constant 0 : i32
    return %c0_i32, %c0_i32_0 : i32, i32
  }
  func.func @transform_5(%arg0: i32, %arg1: i32) -> (i32, i32) {
    %c0_i32 = arith.constant 0 : i32
    %c0_i32_0 = arith.constant 0 : i32
    return %arg0, %c0_i32 : i32, i32
  }
}

</mosaic_0001>

<bundles_post_ra>
// kernel: tpu_custom_call.1
= control target key start
LH: loop header
LB: loop body
LE: loop exit
PB: predicated region body
PF: predicated region fallthrough
CT: control target
= control target key end

     0   :  { %10 = vsyncpa [#allocation4], 0  ;;  %s1014_s0 = inlined_call_operand.vmem [shape: f32[16,32], index: 0, kind: input, shape index: {}]   ;;  %s1015_s1 = inlined_call_operand.vmem [shape: f32[1,32,64], index: 1, kind: input, shape index: {}]   ;;  %s1016_s2 = inlined_call_operand.vmem [shape: f32[1,64], index: 2, kind: input, shape index: {}]   ;;  %s1017_s3 = inlined_call_operand.vmem [shape: f32[64,32], index: 3, kind: input, shape index: {}]   ;;  %s1018_s4 = inlined_call_operand.vmem [shape: f32[1,32], index: 4, kind: input, shape index: {}]   ;;  %s1019_s5 = inlined_call_operand.hbm [shape: f32[16,32], index: 5, kind: output, shape index: {}]  }
   0x1   :  { %12 = vsyncpa [#allocation4 + $0x1], 0  ;;  %s857_s18 = smov 0   ;;  %s859_s19 = smov 0  }
   0x2   :  { %s861_s20 = smov 0   ;;  %s863_s21 = smov 0  }
   0x3   :  { %s865_s22 = smov 0   ;;  %s867_s23 = smov 0  }
   0x4 LB: > { %s605_s24 = sadd.s32 4294967295, %s821_s23   ;;  %s606_s25 = sadd.s32 4294967294, %s821_s23   ;;  %s821_s23 = sphi %s867_s23, %s18_s23   ;;  %s817_s22 = sphi %s865_s22, %s1026_s22   ;;  %s813_s21 = sphi %s863_s21, %s1025_s21   ;;  %s809_s20 = sphi %s861_s20, %s1024_s20   ;;  %s805_s19 = sphi %s859_s19, %s1023_s19   ;;  %s801_s18 = sphi %s857_s18, %s1022_s18  }
   0x5   : > { %s30_s26 = sadd.s32 1, %s817_s22  ;;  %s162_s27 = sadd.s32 1, %s809_s20 }
   0x6   : > { %p32_p0 = scmp.ge.s32.totalorder %s30_s26, 2  ;;  %p172_p1 = scmp.ne.s32.totalorder %s809_s20, %s805_s19 }
   0x7   : > { %p173_p2 = scmp.eq.s32.totalorder %s605_s24, 1  ;;  %p178_p3 = scmp.ne.s32.totalorder %s805_s19, %s801_s18 }
   0x8   : > { %s1028_s26 = smov (%p32_p0, %s30_s26), 0  ;;  %p179_p5 = scmp.eq.s32.totalorder %s606_s25, 1 }
   0x9   : > { %p897_p4 = por %p173_p2, %p172_p1  ;;  %s159_s29 = ssub.s32 %s817_s22, %s1028_s26 }
   0xa   : > { %p612_p6 = scmp.ge.s32.totalorder %s821_s23, 1  ;;  %p160_p7 = scmp.eq.s32.totalorder %s159_s29, 0 }
   0xb   : > { %p904_p8 = por %p179_p5, %p178_p3  ;;  %p230_p9 = scmp.lt.s32.totalorder %s821_s23, 3 }
   0xc   : > { %s910_s6 = scalar_select %p160_p7, %s809_s20, %s162_s27  }
   0xd   : > { %p231_p10 = pnand %p612_p6, %p230_p9 }
   0xe   : > { %v289_v0 = vld [vmem:[%s1015_s1] sm:$0xff] (!%p231_p10)  ;;  %v290_v1 = vld [vmem:[%s1015_s1 + $0x8] sm:$0xff] (!%p231_p10)  ;;  %v291_v2 = vld [vmem:[%s1015_s1 + $0x10] sm:$0xff] (!%p231_p10)  ;;  %v823_v3 = vmov (!%p231_p10), 0.0|0.0   ;;  %vm824_vm0 = vmmov (!%p231_p10), 0   ;;  %v825_v6 = vmov (!%p231_p10), 0.0  }
   0xf   : > { %234 = sbr.rel (%p231_p10) target bundleno = 479 (0x1df), region = 40  ;;  %667 = vmatprep.subr.bf16.mxu0 (!%p231_p10), %v823_v3  ;;  %v668_v4 = vpack.c.bf16 (!%p231_p10), %v290_v1, %v289_v0  ;;  %v292_v5 = vld [vmem:[%s1015_s1 + $0x18] sm:$0xff] (!%p231_p10)  ;;  %645 = vmatprep.mubr.msk.f32.mxu0 (!%p231_p10), %vm824_vm0, %v825_v6  ;;  %p270_p11 = scmp.lt.s32.totalorder (!%p231_p10), %s813_s21, 1  ;;  %v375_v7 = vld [vmem:[%s1017_s3] sm:$0xff] (!%p231_p10)  ;;  %v376_v8 = vld [vmem:[%s1017_s3 + $0x8] sm:$0xff] (!%p231_p10)  ;;  %vm300_vm1 = vcmask (!%p231_p10), 261120  }
  0x10   : > { %673 = vmatprep.subr.bf16.mxu1 (!%p231_p10), %v823_v3  ;;  %v674_v9 = vpack.c.bf16 (!%p231_p10), %v376_v8, %v375_v7  ;;  %v377_v10 = vld [vmem:[%s1017_s3 + $0x10] sm:$0xff] (!%p231_p10)  ;;  %v378_v11 = vld [vmem:[%s1017_s3 + $0x18] sm:$0xff] (!%p231_p10)  ;;  %664 = vmatprep.mubr.msk.f32.mxu1 (!%p231_p10), %vm824_vm0, %v825_v6  ;;  %v671_v12 = vpack.c.bf16 (!%p231_p10), %v292_v5, %v291_v2  ;;  %v379_v14 = vld [vmem:[%s1017_s3 + $0x20] sm:$0xff] (!%p231_p10)  ;;  %vm383_vm2 = vcmask (!%p231_p10), 523264   ;;  %s620_s12 = sshll.u32 (!%p231_p10), %s813_s21, 7 }
  0x11   : > { %669 = vmatpush3.bf16.msra.mxu0 (!%p231_p10), %v668_v4  ;;  %v677_v13 = vpack.c.bf16 (!%p231_p10), %v378_v11, %v377_v10  ;;  %v380_v15 = vld [vmem:[%s1017_s3 + $0x28] sm:$0xff] (!%p231_p10)  ;;  %v381_v18 = vld [vmem:[%s1017_s3 + $0x30] sm:$0xff] (!%p231_p10)  ;;  %v382_v19 = vld [vmem:[%s1017_s3 + $0x38] sm:$0xff] (!%p231_p10)  ;;  %s966_s17 = scalar_lea.hbm (!%p231_p10), %s1019_s5, %s620_s12 }
  0x12   : > { %670 = vmatprep.subr.bf16.mxu0 (!%p231_p10), %v823_v3  ;;  %675 = vmatpush3.bf16.msra.mxu1 (!%p231_p10), %v674_v9  ;;  %v680_v17 = vpack.c.bf16 (!%p231_p10), %v380_v15, %v379_v14  ;;  %v683_v20 = vpack.c.bf16 (!%p231_p10), %v382_v19, %v381_v18  ;;  %v615_v21 = vld [vmem:[%s1016_s2] ss:$0 sm:$0xff] (!%p231_p10) }
  0x13   : > { %676 = vmatprep.subr.bf16.mxu1 (!%p231_p10), %v823_v3  ;;  %v618_v28 = vld [vmem:[%s1018_s4] ss:$0 sm:$0xff] (!%p231_p10) }
  0x15   : > { %672 = vmatpush3.bf16.msra.mxu0 (!%p231_p10), %v671_v12 }
  0x16   : > { %s271_s8 = scalar_select %p270_p11, %s813_s21, 1  ;;  %678 = vmatpush3.bf16.msra.mxu1 %v677_v13 }
  0x17   : > { %679 = vmatprep.subr.bf16.mxu1 %v823_v3  ;;  %s826_s21 = smov [#allocation3]  }
  0x18   : > { %s614_s9 = sshll.u32 %s271_s8, 3  ;;  %s267_s8 = sand.u32 1, %s805_s19  }
  0x19   : > { %s273_s16 = scalar_lea.vmem %s1014_s0, %s614_s9  ;;  %s613_s9 = sshll.u32 %s267_s8, 3 }
  0x1a   : > { %v288_v16 = vld [vmem:[%s273_s16] sm:$0xff]  ;;  %681 = vmatpush3.bf16.msra.mxu1 %v680_v17  ;;  %s269_s13 = scalar_lea.vmem [#allocation3], %s613_s9  ;;  %s483_s24 = scalar_lea.sflag [#allocation4], %s267_s8 }
  0x1b   : > { %646 = vmatmul.mubr.msk.f32.vlgmr.msra.gmra.mrb[0].mxu0 %vm300_vm1, %v288_v16  ;;  %682 = vmatprep.subr.bf16.mxu1 %v823_v3  ;;  %s496_s14 = sshll.u32 %s269_s13, 4  ;;  %s747_s27 = sshll.u32 %s826_s21, 4  ;;  %s968_s14 = int_to_ptr.vmem [resolvable:$true] %s496_s14  ;;  %s748_s27 = int_to_ptr.vmem [resolvable:$false] %s747_s27 }
  0x1c   : > { %s743_s25 = scalar_lea.vmem %s968_s14, 128  ;;  %s749_s29 = scalar_lea.vmem %s748_s27, 256 }
  0x1d   : > { %p744_p12 = scmp.ne.s32.totalorder %s968_s14, %s743_s25  ;;  %p750_p1 = scmp.lt.s32.totalorder %s968_s14, %s748_s27 }
  0x1e   : > { %684 = vmatpush3.bf16.msra.mxu1 %v683_v20  ;;  %p751_p2 = scmp.lt.s32.totalorder %s749_s29, %s743_s25 }
  0x1f   : > { %p745_p13 = pnand %p744_p12, %p897_p4 }
  0x20   : > { %p752_p3 = por %p751_p2, %p750_p1 }
  0x21   : > { %p746_p0 = pneg %p745_p13 }
  0x23   : > { %p753_p5 = pnand %p752_p3, %p746_p0 }
  0xee   : > { %v370_v22 = vpop.f32.mrb[0].mxu0 }
  0xef   : > { %v371_v23 = vadd.f32 %v615_v21, %v370_v22  ;;  %v647_v24 = vpop.f32.mrb[1].mxu0 }
  0xf1   : > { %v374_v25 = vmax.f32 %v371_v23, 0.0 }
  0xf3   : > { %665 = vmatmul.mubr.msk.f32.vlgmr.msra.gmra.mrb[0].mxu1 %vm383_vm2, %v374_v25 }
 0x1c6   : > { %v453_v26 = vpop.f32.mrb[0].mxu1 }
 0x1c7   : > { %461 = vst.msk [vmem:[#allocation2] sm:$0xff] %vm300_vm1, %v453_v26  ;;  %v666_v27 = vpop.f32.mrb[1].mxu1 }
 0x1ce   : > { %v472_v29 = vld [vmem:[#allocation2] sm:$0xff] }
 0x1cf   : > { %v480_v30 = vadd.f32 %v618_v28, %v472_v29 }
 0x1d1   : > { %481 = vst.msk [vmem:[%s269_s13] sm:$0xff] %vm300_vm1, %v480_v30 }
 0x1d2   : > { %756 = shalt.err (!%p753_p5)
}
 0x1d3   : > { %s757_s7 = scalar_lea.hbm %s966_s17, 128  ;;  %s761_s10 = scalar_lea.hbm %s1019_s5, 256 }
 0x1d4   : > { %p758_p6 = scmp.ne.s32.totalorder %s966_s17, %s757_s7  ;;  %p762_p10 = scmp.lt.u32.totalorder %s966_s17, %s1019_s5 }
 0x1d5   : > { %p763_p11 = scmp.lt.u32.totalorder %s761_s10, %s757_s7  ;;  %p765_p13 = scmp.lt.u32.totalorder %s757_s7, %s966_s17 }
 0x1d6   : > { %p759_p7 = pnand %p758_p6, %p897_p4 }
 0x1d7   : > { %p764_p12 = por %p763_p11, %p762_p10 }
 0x1d8   : > { %p760_p9 = pneg %p759_p7 }
 0x1d9   : > { %p766_p0 = por %p765_p13, %p764_p12 }
 0x1db   : > { %p767_p1 = pnand %p766_p0, %p760_p9 }
 0x1dd   : > { %770 = shalt.err (!%p767_p1)
}
 0x1de   : > { %685 = dma.vmem_to_hbm [thread:$0]  (%p897_p4), %s968_s14, 128, %s966_s17, %s483_s24  }
 0x1df PF: > { %p691_p2 = scmp.ge.s32.totalorder %s821_s23, 2  ;;  %s508_s13 = sand.u32 1, %s801_s18  }
 0x1e0   : > { %s509_s15 = scalar_lea.sflag [#allocation4], %s508_s13 }
 0x1e1   : > { %p688_p3 = pnand %p691_p2, %p904_p8 }
 0x1e3   : > { %796 = dma.done.wait (!%p688_p3), %s509_s15, 128  }
 0x1e4   : > { %798 = vsyncadd (!%p688_p3), %s509_s15, 4294967168  ;;  %s18_s23 = sadd.s32 1, %s821_s23   ;;  %s1022_s18 = smov %s805_s19 }
 0x1e5   : > { %p15_p5 = scmp.ge.s32.totalorder %s18_s23, 4   ;;  %s1023_s19 = smov %s809_s20 }
 0x1e6   : > { %s1024_s20 = smov %s910_s6  ;;  %s1025_s21 = smov %s817_s22 }
 0x1e7   : > { %s1026_s22 = smov %s1028_s26  ;;  %17 = sbr.rel (!%p15_p5) target bundleno = 4 (0x4), region = 96 }
 0x1ee   :  { %514 = vsyncpa [#allocation4], 1 }
 0x1ef   :  { %516 = vsyncpa [#allocation4 + $0x1], 1 }

</bundles_post_ra>
